<compile_context>
chip_gen: v5e
topology: v5e:2x2
jax: 0.10.0
libtpu: 0.0.40
codegen_flags: <defaults>
</compile_context>

<pallas_src>
import functools

import jax
import jax.numpy as jnp
from jax.experimental import pallas as pl
from jax.experimental.pallas import tpu as pltpu


def _ce_loss_kernel(pred_ref, label_ref, out_ref, *, num_modes, num_coords):
    c = num_coords + 1                          # values per mode (24 coords + 1 logit)
    x = pred_ref[...].astype(jnp.float32)       # (bt, M*C)   samples on sublanes
    lab = label_ref[...].astype(jnp.float32)    # (bt, K)

    # Static lane slices per mode (no 3-D reshape / relayout in-kernel).
    logit_cols = [x[:, j * c + num_coords:(j + 1) * c] for j in range(num_modes)]  # M x (bt,1)

    def sse_col(j):
        d = x[:, j * c: j * c + num_coords] - lab            # (bt, K)
        return jnp.sum(d * d, axis=1, keepdims=True)         # (bt, 1)

    # Running first-occurrence argmin over modes, fused with the target-logit gather.
    best_sse = sse_col(0)
    best_logit = logit_cols[0]
    row_max = logit_cols[0]
    for j in range(1, num_modes):
        sse_j = sse_col(j)
        better = sse_j < best_sse                # strict < -> first index wins on ties
        best_sse = jnp.where(better, sse_j, best_sse)
        best_logit = jnp.where(better, logit_cols[j], best_logit)
        row_max = jnp.maximum(row_max, logit_cols[j])

    # Cross-entropy with integer target: logsumexp(logits) - logits[target] (max-shifted).
    exp_sum = jnp.exp(logit_cols[0] - row_max)
    for j in range(1, num_modes):
        exp_sum = exp_sum + jnp.exp(logit_cols[j] - row_max)
    per_row = row_max + jnp.log(exp_sum) - best_logit        # (bt, 1)

    # One scalar partial sum per grid step; the mean over B happens in the wrapper.
    out_ref[...] = jnp.reshape(jnp.sum(per_row), (1, 1, 1))


# Rough in-kernel working set per sample: the cast-to-f32 pred/label rows plus a handful of
# lane-padded (bt, 128) f32 columns for the per-mode scalars -> ~8 KiB / sample.  An ~8 MiB
# budget keeps the kernel well inside every generation's scoped-VMEM default (16 MiB v5e,
# 32 MiB v6e/v7x, 64 MiB physical on v7x) while still reaching ~1K-sample tiles, i.e. only a
# few grid steps for realistic batch sizes.
_ROW_VMEM_BYTES = 8 * 1024
_VMEM_BUDGET_BYTES = 8 * 1024 * 1024


def _pick_batch_tile(b):
    max_bt = max(8, _VMEM_BUDGET_BYTES // _ROW_VMEM_BYTES)    # 1024
    if b <= max_bt:
        return b                    # single full-batch step (block == full array dims)
    bt = (max_bt // 8) * 8
    while bt >= 8:
        if b % bt == 0:             # multiple-of-8 divisor keeps the (8,128) block rule
            return bt
        bt -= 8
    # No aligned divisor (awkward batch size): fall back to one full-batch step.
    return b


def ce_loss(pred, label_waypoint):
    """Pallas implementation of CELoss.forward."""
    assert pred.ndim == 3
    b, m, c = pred.shape
    k = c - 1

    # Zero-cost contiguous views: samples on sublanes, everything else on lanes.
    pred2d = pred.reshape(b, m * c)             # (B, M*C)
    label2d = label_waypoint.reshape(-1, k)     # mirrors .view(-1, 24)
    assert label2d.shape[0] == b, (label2d.shape, pred.shape)

    bt = _pick_batch_tile(b)
    grid_len = b // bt

    kernel = functools.partial(_ce_loss_kernel, num_modes=m, num_coords=k)

    partials = pl.pallas_call(
        kernel,
        out_shape=jax.ShapeDtypeStruct((grid_len, 1, 1), jnp.float32),
        grid=(grid_len,),
        in_specs=[
            pl.BlockSpec((bt, m * c), lambda i: (i, 0)),
            pl.BlockSpec((bt, k), lambda i: (i, 0)),
        ],
        # One (1,1,1) partial-sum block per grid step -> no carried state on the grid axis,
        # so it can be sharded across both TensorCores on v7x.
        out_specs=pl.BlockSpec((1, 1, 1), lambda i: (i, 0, 0)),
        compiler_params=pltpu.CompilerParams(
            dimension_semantics=("parallel",),
            vmem_limit_bytes=32 * 1024 * 1024,
        ),
    )(pred2d, label2d)

    return jnp.sum(partials) * (1.0 / float(b))


class CELossPallas:
    """Mirror of the PyTorch CELoss module."""

    def __call__(self, pred, batch):
        return ce_loss(pred, batch["label_waypoint"])


if __name__ == "__main__":
    key = jax.random.PRNGKey(0)
    k_pred, k_label = jax.random.split(key)

    # Shapes implied by the forward: M trajectory modes, each 24 coords + 1 logit;
    # label_waypoint is any shape that views to (B, 24) (here 12 waypoints x 2 coords).
    B, M, C = 2, 6, 25
    pred = jax.random.normal(k_pred, (B, M, C), dtype=jnp.float32)
    label_waypoint = jax.random.normal(k_label, (B, 12, 2), dtype=jnp.float32)
    batch = {"label_waypoint": label_waypoint}

    loss_mod = CELossPallas()
    loss = loss_mod(pred, batch)
    loss = jax.block_until_ready(loss)

    # Plain-JAX reference (same math as the PyTorch module).
    logit_ref = pred[:, :, -1]
    coord_ref = pred[:, :, :-1]
    label_ref = label_waypoint.reshape(-1, 24)
    sse_ref = jnp.sum((coord_ref - label_ref[:, None, :]) ** 2, axis=2)
    tgt_ref = jnp.argmin(sse_ref, axis=1)
    logp_ref = jax.nn.log_softmax(logit_ref, axis=1)
    ref = -jnp.mean(logp_ref[jnp.arange(B), tgt_ref])

    assert jnp.allclose(loss, ref, rtol=1e-5, atol=1e-6), (loss, ref)
    print("KERNEL_OK")
</pallas_src>

<mosaic_0001>
module attributes {stable_mosaic.version = 11 : i64} {
  func.func @_ce_loss_kernel(%arg0: i32, %arg1: memref<2x150xf32, #tpu.memory_space<vmem>>, %arg2: memref<2x24xf32, #tpu.memory_space<vmem>>, %arg3: memref<1x1x1xf32, #tpu.memory_space<vmem>>) attributes {dimension_semantics = [#tpu.dimension_semantics<parallel>], iteration_bounds = array<i64: 1>, scalar_prefetch = 0 : i64, scratch_operands = 0 : i64, tpu.core_type = #tpu.core_type<tc>, window_params = [{transform_indices = @transform_0, window_bounds = array<i64: 2, 150>}, {transform_indices = @transform_1, window_bounds = array<i64: 2, 24>}, {transform_indices = @transform_2, window_bounds = array<i64: 1, 1, 1>}]} {
    %c0 = arith.constant 0 : index
    %c0_0 = arith.constant 0 : index
    %0 = vector.load %arg1[%c0, %c0_0] : memref<2x150xf32, #tpu.memory_space<vmem>>, vector<2x150xf32>
    %c0_1 = arith.constant 0 : index
    %c0_2 = arith.constant 0 : index
    %1 = vector.load %arg2[%c0_1, %c0_2] : memref<2x24xf32, #tpu.memory_space<vmem>>, vector<2x24xf32>
    %2 = vector.extract_strided_slice %0 {offsets = [0, 24], sizes = [2, 1], strides = [1, 1]} : vector<2x150xf32> to vector<2x1xf32>
    %3 = vector.extract_strided_slice %0 {offsets = [0, 49], sizes = [2, 1], strides = [1, 1]} : vector<2x150xf32> to vector<2x1xf32>
    %4 = vector.extract_strided_slice %0 {offsets = [0, 74], sizes = [2, 1], strides = [1, 1]} : vector<2x150xf32> to vector<2x1xf32>
    %5 = vector.extract_strided_slice %0 {offsets = [0, 99], sizes = [2, 1], strides = [1, 1]} : vector<2x150xf32> to vector<2x1xf32>
    %6 = vector.extract_strided_slice %0 {offsets = [0, 124], sizes = [2, 1], strides = [1, 1]} : vector<2x150xf32> to vector<2x1xf32>
    %7 = vector.extract_strided_slice %0 {offsets = [0, 149], sizes = [2, 1], strides = [1, 1]} : vector<2x150xf32> to vector<2x1xf32>
    %8 = vector.extract_strided_slice %0 {offsets = [0, 0], sizes = [2, 24], strides = [1, 1]} : vector<2x150xf32> to vector<2x24xf32>
    %9 = arith.subf %8, %1 : vector<2x24xf32>
    %10 = arith.mulf %9, %9 : vector<2x24xf32>
    %cst = arith.constant dense<0.000000e+00> : vector<2xf32>
    %11 = vector.multi_reduction <add>, %10, %cst [1] : vector<2x24xf32> to vector<2xf32>
    %12 = vector.shape_cast %11 : vector<2xf32> to vector<2x1xf32>
    %13 = vector.extract_strided_slice %0 {offsets = [0, 25], sizes = [2, 24], strides = [1, 1]} : vector<2x150xf32> to vector<2x24xf32>
    %14 = arith.subf %13, %1 : vector<2x24xf32>
    %15 = arith.mulf %14, %14 : vector<2x24xf32>
    %cst_3 = arith.constant dense<0.000000e+00> : vector<2xf32>
    %16 = vector.multi_reduction <add>, %15, %cst_3 [1] : vector<2x24xf32> to vector<2xf32>
    %17 = vector.shape_cast %16 : vector<2xf32> to vector<2x1xf32>
    %18 = arith.cmpf olt, %17, %12 : vector<2x1xf32>
    %19 = arith.select %18, %17, %12 : vector<2x1xi1>, vector<2x1xf32>
    %20 = arith.select %18, %3, %2 : vector<2x1xi1>, vector<2x1xf32>
    %21 = arith.maximumf %2, %3 : vector<2x1xf32>
    %22 = vector.extract_strided_slice %0 {offsets = [0, 50], sizes = [2, 24], strides = [1, 1]} : vector<2x150xf32> to vector<2x24xf32>
    %23 = arith.subf %22, %1 : vector<2x24xf32>
    %24 = arith.mulf %23, %23 : vector<2x24xf32>
    %cst_4 = arith.constant dense<0.000000e+00> : vector<2xf32>
    %25 = vector.multi_reduction <add>, %24, %cst_4 [1] : vector<2x24xf32> to vector<2xf32>
    %26 = vector.shape_cast %25 : vector<2xf32> to vector<2x1xf32>
    %27 = arith.cmpf olt, %26, %19 : vector<2x1xf32>
    %28 = arith.select %27, %26, %19 : vector<2x1xi1>, vector<2x1xf32>
    %29 = arith.select %27, %4, %20 : vector<2x1xi1>, vector<2x1xf32>
    %30 = arith.maximumf %21, %4 : vector<2x1xf32>
    %31 = vector.extract_strided_slice %0 {offsets = [0, 75], sizes = [2, 24], strides = [1, 1]} : vector<2x150xf32> to vector<2x24xf32>
    %32 = arith.subf %31, %1 : vector<2x24xf32>
    %33 = arith.mulf %32, %32 : vector<2x24xf32>
    %cst_5 = arith.constant dense<0.000000e+00> : vector<2xf32>
    %34 = vector.multi_reduction <add>, %33, %cst_5 [1] : vector<2x24xf32> to vector<2xf32>
    %35 = vector.shape_cast %34 : vector<2xf32> to vector<2x1xf32>
    %36 = arith.cmpf olt, %35, %28 : vector<2x1xf32>
    %37 = arith.select %36, %35, %28 : vector<2x1xi1>, vector<2x1xf32>
    %38 = arith.select %36, %5, %29 : vector<2x1xi1>, vector<2x1xf32>
    %39 = arith.maximumf %30, %5 : vector<2x1xf32>
    %40 = vector.extract_strided_slice %0 {offsets = [0, 100], sizes = [2, 24], strides = [1, 1]} : vector<2x150xf32> to vector<2x24xf32>
    %41 = arith.subf %40, %1 : vector<2x24xf32>
    %42 = arith.mulf %41, %41 : vector<2x24xf32>
    %cst_6 = arith.constant dense<0.000000e+00> : vector<2xf32>
    %43 = vector.multi_reduction <add>, %42, %cst_6 [1] : vector<2x24xf32> to vector<2xf32>
    %44 = vector.shape_cast %43 : vector<2xf32> to vector<2x1xf32>
    %45 = arith.cmpf olt, %44, %37 : vector<2x1xf32>
    %46 = arith.select %45, %44, %37 : vector<2x1xi1>, vector<2x1xf32>
    %47 = arith.select %45, %6, %38 : vector<2x1xi1>, vector<2x1xf32>
    %48 = arith.maximumf %39, %6 : vector<2x1xf32>
    %49 = vector.extract_strided_slice %0 {offsets = [0, 125], sizes = [2, 24], strides = [1, 1]} : vector<2x150xf32> to vector<2x24xf32>
    %50 = arith.subf %49, %1 : vector<2x24xf32>
    %51 = arith.mulf %50, %50 : vector<2x24xf32>
    %cst_7 = arith.constant dense<0.000000e+00> : vector<2xf32>
    %52 = vector.multi_reduction <add>, %51, %cst_7 [1] : vector<2x24xf32> to vector<2xf32>
    %53 = vector.shape_cast %52 : vector<2xf32> to vector<2x1xf32>
    %54 = arith.cmpf olt, %53, %46 : vector<2x1xf32>
    %55 = arith.select %54, %7, %47 : vector<2x1xi1>, vector<2x1xf32>
    %56 = arith.maximumf %48, %7 : vector<2x1xf32>
    %57 = arith.subf %2, %56 : vector<2x1xf32>
    %58 = math.exp %57 : vector<2x1xf32>
    %59 = arith.subf %3, %56 : vector<2x1xf32>
    %60 = math.exp %59 : vector<2x1xf32>
    %61 = arith.addf %58, %60 : vector<2x1xf32>
    %62 = arith.subf %4, %56 : vector<2x1xf32>
    %63 = math.exp %62 : vector<2x1xf32>
    %64 = arith.addf %61, %63 : vector<2x1xf32>
    %65 = arith.subf %5, %56 : vector<2x1xf32>
    %66 = math.exp %65 : vector<2x1xf32>
    %67 = arith.addf %64, %66 : vector<2x1xf32>
    %68 = arith.subf %6, %56 : vector<2x1xf32>
    %69 = math.exp %68 : vector<2x1xf32>
    %70 = arith.addf %67, %69 : vector<2x1xf32>
    %71 = arith.subf %7, %56 : vector<2x1xf32>
    %72 = math.exp %71 : vector<2x1xf32>
    %73 = arith.addf %70, %72 : vector<2x1xf32>
    %74 = math.log %73 : vector<2x1xf32>
    %75 = arith.addf %56, %74 : vector<2x1xf32>
    %76 = arith.subf %75, %55 : vector<2x1xf32>
    %77 = vector.shape_cast %76 : vector<2x1xf32> to vector<1x2x1xf32>
    %cst_8 = arith.constant dense<0.000000e+00> : vector<1xf32>
    %78 = vector.multi_reduction <add>, %77, %cst_8 [1, 2] : vector<1x2x1xf32> to vector<1xf32>
    %79 = vector.shape_cast %78 : vector<1xf32> to vector<1x1x1xf32>
    %80 = vector.extract %79[0, 0, 0] : f32 from vector<1x1x1xf32>
    %81 = vector.broadcast %80 : f32 to vector<1x1x1xf32>
    %c0_9 = arith.constant 0 : index
    %c0_10 = arith.constant 0 : index
    %c0_11 = arith.constant 0 : index
    %82 = vector.load %arg3[%c0_9, %c0_10, %c0_11] : memref<1x1x1xf32, #tpu.memory_space<vmem>>, vector<1x1x1xf32>
    tpu.vector_store %arg3[%c0_9, %c0_10, %c0_11], %81 {strides = array<i32>} : memref<1x1x1xf32, #tpu.memory_space<vmem>>, vector<1x1x1xf32>,
    return
  }
  func.func @transform_0(%arg0: i32) -> (i32, i32) {
    %c0_i32 = arith.constant 0 : i32
    %c0_i32_0 = arith.constant 0 : i32
    return %arg0, %c0_i32 : i32, i32
  }
  func.func @transform_1(%arg0: i32) -> (i32, i32) {
    %c0_i32 = arith.constant 0 : i32
    %c0_i32_0 = arith.constant 0 : i32
    return %arg0, %c0_i32 : i32, i32
  }
  func.func @transform_2(%arg0: i32) -> (i32, i32, i32) {
    %c0_i32 = arith.constant 0 : i32
    %c0_i32_0 = arith.constant 0 : i32
    %c0_i32_1 = arith.constant 0 : i32
    return %arg0, %c0_i32, %c0_i32_0 : i32, i32, i32
  }
}

</mosaic_0001>

<bundles_post_ra>
// kernel: tpu_custom_call.1
= control target key start
LH: loop header
LB: loop body
LE: loop exit
PB: predicated region body
PF: predicated region fallthrough
CT: control target
= control target key end

     0   :  { %7 = vsyncpa [#allocation3], 0  ;;  %s542_s0 = inlined_call_operand.hbm [shape: f32[2,150], index: 0, kind: input, shape index: {}]   ;;  %s543_s1 = inlined_call_operand.hbm [shape: f32[2,24], index: 1, kind: input, shape index: {}]   ;;  %s544_s2 = inlined_call_operand.hbm [shape: f32[1,1,1], index: 2, kind: output, shape index: {}]  }
   0x1   :  { %8 = vsyncpa [#allocation6], 0 }
   0x2   :  { %9 = vsyncpa [#allocation4], 0  ;;  %s15_s11 = sshll.u32 %s542_s0, 4  ;;  %s417_s12 = smov [#allocation2]   ;;  %s16_s11 = int_to_ptr.hbm [resolvable:$true] %s15_s11 }
   0x3   :  { %s17_s13 = sshll.u32 %s417_s12, 4  ;;  %s26_s16 = sshll.u32 %s543_s1, 4  ;;  %s18_s13 = int_to_ptr.vmem [resolvable:$true] %s17_s13  ;;  %s27_s16 = int_to_ptr.hbm [resolvable:$true] %s26_s16 }
   0x4   :  { %20 = dma.hbm_to_vmem [thread:$0]  %s16_s11, 64, %s18_s13, [#allocation3]  }
   0x5   :  { %s418_s17 = smov [#allocation5]  }
   0x6   :  { %s28_s18 = sshll.u32 %s418_s17, 4  ;;  %s29_s18 = int_to_ptr.vmem [resolvable:$true] %s28_s18 }
   0x7   :  { %31 = dma.hbm_to_vmem [thread:$0]  %s27_s16, 32, %s29_s18, [#allocation6]  }
   0x8   :  { %411 = dma.done.wait [#allocation3], 64  }
   0x9   :  { %412 = vsyncadd [#allocation3], 4294967232 }
   0xa   :  { %413 = dma.done.wait [#allocation6], 32  }
   0xb   :  { %414 = vsyncadd [#allocation6], 4294967264  ;;  %v458_v0 = vld [vmem:[#allocation5] sm:$0x3]  ;;  %s419_s0 = smov 25   ;;  %s420_s19 = smov 75  }
   0xc   :  { %49 = vrot.lane.b32.xlu0 %v458_v0, %s419_s0  ;;  %107 = vrot.lane.b32.xlu1 %v458_v0, %s420_s19  ;;  %s421_s1 = smov 125   ;;  %s422_s20 = smov 50   ;;  %v469_v1 = vld [vmem:[#allocation2] sm:$0xf]  ;;  %vm175_vm0 = vcmask 23552   ;;  %vm162_vm1 = vcmask 1022976  }
   0xd   :  { %159 = vrot.lane.b32.xlu2 %v458_v0, %s421_s1  ;;  %s423_s21 = smov 100   ;;  %s424_s22 = smov 103   ;;  %v42_v42 = vsub.f32 %v469_v1, %v458_v0  ;;  %vm44_vm2 = vcmask 189440   ;;  %vm271_vm8 = vcmask 1024   ;;  %vm283_vm9 = vcmask 0  }
   0xe   :  { %s425_s23 = smov 78   ;;  %s426_s24 = smov 53  }
   0xf   :  { %s427_s25 = smov 3   ;;  %s428_s26 = smov 28   ;;  %v43_v43 = vmul.f32 %v42_v42, %v42_v42 }
  0x10   :  { %s429_s27 = smov 107   ;;  %s430_s28 = smov 104  }
  0x11   :  { %s431_s29 = smov 54   ;;  %v45_v44 = vsel %vm44_vm2, %v43_v43, 0.0  ;;  %s432_s30 = smov 79  }
  0x12   :  { %s433_s3 = smov 29   ;;  %s434_s4 = smov 4  }
  0x13   :  { %s435_s5 = smov 24   ;;  %s436_s6 = smov [#allocation7]  }
  0x14   :  { %81 = vrot.lane.b32.xlu0 %v458_v0, %s422_s20  ;;  %133 = vrot.lane.b32.xlu1 %v458_v0, %s423_s21  ;;  %s290_s7 = sshll.u32 %s436_s6, 4  ;;  %s292_s10 = sshll.u32 %s544_s2, 4  ;;  %s291_s7 = int_to_ptr.vmem [resolvable:$true] %s290_s7  ;;  %s293_s10 = int_to_ptr.hbm [resolvable:$true] %s292_s10 }
  0x15   :  { %77 = vrot.lane.b32.xlu2 %v469_v1, %s424_s22 }
  0x1c   :  { %103 = vrot.lane.b32.xlu0 %v469_v1, %s425_s23  ;;  %129 = vrot.lane.b32.xlu1 %v469_v1, %s426_s24 }
  0x1d   :  { %188 = vrot.lane.b32.xlu2 %v469_v1, %s427_s25 }
  0x24   :  { %155 = vrot.lane.b32.xlu0 %v469_v1, %s428_s26 }
  0x25   :  { %242 = vrot.lane.b32.xlu2 %v469_v1, %s429_s27 }
  0x67   :  { %v160_v2 = vpop.permute.xlu2 %159 }
  0x68   :  { %v161_v34 = vrot.slane %v160_v2, 6 }
  0x6a   :  { %v163_v35 = vsel %vm162_vm1, %v161_v34, %v160_v2 }
  0x6b   :  { %v165_v37 = vsub.f32 %v469_v1, %v163_v35 }
  0x6d   :  { %v166_v38 = vmul.f32 %v165_v37, %v165_v37 }
  0x6f   :  { %v78_v7 = vpop.permute.xlu2 %77 }
  0x70   :  { %v80_v11 = vmax.f32 %v469_v1, %v78_v7 }
  0x77   :  { %v189_v14 = vpop.permute.xlu2 %188 }
  0x78   :  { %v190_v17 = vrot.slane %v189_v14, 2 }
  0x7a   :  { %v191_v20 = vsel %vm175_vm0, %v189_v14, %v190_v17 }
  0x7e   :  { %v50_v3 = vpop.permute.xlu0 %49  ;;  %v108_v4 = vpop.permute.xlu1 %107 }
  0x7f   :  { %v52_v5 = vsub.f32 %v469_v1, %v50_v3  ;;  %v110_v27 = vsub.f32 %v469_v1, %v108_v4  ;;  %v243_v45 = vpop.permute.xlu2 %242 }
  0x80   :  { %v244_v57 = vrot.slane %v243_v45, 2 }
  0x81   :  { %v53_v6 = vmul.f32 %v52_v5, %v52_v5  ;;  %v111_v28 = vmul.f32 %v110_v27, %v110_v27 }
  0x83   :  { %55 = vst [vmem:[#allocation1] ss:$4 sm:$0xff] %v53_v6 }
  0x86   :  { %v82_v8 = vpop.permute.xlu0 %81  ;;  %v134_v9 = vpop.permute.xlu1 %133 }
  0x87   :  { %v84_v18 = vsub.f32 %v469_v1, %v82_v8  ;;  %v136_v31 = vsub.f32 %v469_v1, %v134_v9 }
  0x89   :  { %v85_v22 = vmul.f32 %v84_v18, %v84_v18  ;;  %v137_v32 = vmul.f32 %v136_v31, %v136_v31 }
  0x8a   :  { %v56_v10 = vld.sshfl [vmem:[#allocation1] sm:$0xff pattern:$0x73625140] }
  0x8b   :  { %66 = vst [vmem:[#allocation1] ss:$4 sm:$0xff] %v469_v1 }
  0x8e   :  { %v104_v12 = vpop.permute.xlu0 %103  ;;  %v130_v15 = vpop.permute.xlu1 %129 }
  0x8f   :  { %v106_v13 = vmax.f32 %v80_v11, %v104_v12 }
  0x91   :  { %v132_v19 = vmax.f32 %v106_v13, %v130_v15 }
  0x92   :  { %v67_v16 = vld.sshfl [vmem:[#allocation1] sm:$0xff pattern:$0x73625140] }
  0x93   :  { %71 = vst [vmem:[#allocation1] ss:$4 sm:$0xff] %v469_v1 }
  0x96   :  { %v156_v21 = vpop.permute.xlu0 %155 }
  0x97   :  { %v158_v23 = vmax.f32 %v132_v19, %v156_v21 }
  0x99   :  { %v489_v24 = vmax.f32 %v158_v23, %v191_v20 }
  0x9a   :  { %v72_v25 = vld.sshfl [vmem:[#allocation1] sm:$0xff pattern:$0x73625140] }
  0x9b   :  { %87 = vst [vmem:[#allocation1] ss:$4 sm:$0xff] %v85_v22  ;;  %209 = vrot.lane.b32.xlu2 %v489_v24, %s422_s20  ;;  %198 = vrot.lane.b32.xlu1 %v489_v24, %s419_s0 }
  0x9c   :  { %220 = vrot.lane.b32.xlu0 %v489_v24, %s420_s19 }
  0xa2   :  { %v88_v26 = vld.sshfl [vmem:[#allocation1] sm:$0xff pattern:$0x73625140] }
  0xa3   :  { %231 = vrot.lane.b32.xlu1 %v489_v24, %s423_s21  ;;  %89 = vrot.lane.b32.xlu2 %v88_v26, %s425_s23  ;;  %97 = vst [vmem:[#allocation1] ss:$4 sm:$0xff] %v469_v1 }
  0xa4   :  { %246 = vrot.lane.b32.xlu0 %v489_v24, %s430_s28 }
  0xaa   :  { %v98_v29 = vld.sshfl [vmem:[#allocation1] sm:$0xff pattern:$0x73625140] }
  0xab   :  { %113 = vst [vmem:[#allocation1] ss:$4 sm:$0xff] %v111_v28  ;;  %57 = vrot.lane.b32.xlu1 %v56_v10, %s424_s22 }
  0xb2   :  { %v114_v30 = vld.sshfl [vmem:[#allocation1] sm:$0xff pattern:$0x73625140] }
  0xb3   :  { %115 = vrot.lane.b32.xlu0 %v114_v30, %s426_s24  ;;  %123 = vst [vmem:[#allocation1] ss:$4 sm:$0xff] %v469_v1 }
  0xba   :  { %v124_v33 = vld.sshfl [vmem:[#allocation1] sm:$0xff pattern:$0x73625140] }
  0xbb   :  { %139 = vst [vmem:[#allocation1] ss:$4 sm:$0xff] %v137_v32  ;;  %99 = vrot.lane.b32.xlu0 %v98_v29, %s431_s29 }
  0xc2   :  { %v140_v36 = vld.sshfl [vmem:[#allocation1] sm:$0xff pattern:$0x73625140] }
  0xc3   :  { %141 = vrot.lane.b32.xlu1 %v140_v36, %s428_s26  ;;  %149 = vst [vmem:[#allocation1] ss:$4 sm:$0xff] %v469_v1 }
  0xca   :  { %v150_v39 = vld.sshfl [vmem:[#allocation1] sm:$0xff pattern:$0x73625140] }
  0xcb   :  { %168 = vst [vmem:[#allocation1] ss:$4 sm:$0xff] %v166_v38 }
  0xd2   :  { %v170_v40 = vld.sshfl [vmem:[#allocation1 + $0x8] sm:$0xff pattern:$0x73625140]  ;;  %v169_v41 = vld.sshfl [vmem:[#allocation1] sm:$0xff pattern:$0x73625140] }
  0xd3   :  { %173 = vrot.lane.b32.xlu0 %v170_v40, %s427_s25  ;;  %171 = vrot.lane.b32.xlu2 %v169_v41, %s427_s25  ;;  %182 = vst [vmem:[#allocation1] ss:$4 sm:$0xff] %v469_v1 }
  0xda   :  { %v183_v13 = vld.sshfl [vmem:[#allocation1 + $0x8] sm:$0xff pattern:$0x73625140] }
  0xdb   :  { %73 = vrot.lane.b32.xlu2 %v72_v25, %s430_s28 }
  0xed   :  { %46 = vadd.xlane.f32.xlu1 %v45_v44 }
  0xf5   :  { %v210_v46 = vpop.permute.xlu2 %209 }
  0xf6   :  { %v212_v7 = vsub.f32 %v469_v1, %v210_v46 }
  0xf8   :  { %v213_v12 = vmul.f32 1.442695, %v212_v7 }
  0xfd   :  { %v90_v47 = vpop.permute.xlu2 %89 }
  0xfe   :  { %v92_v48 = vsel %vm44_vm2, %v90_v47, 0.0 }
  0xff   :  { %93 = vadd.xlane.f32.xlu0 %v92_v48 }
 0x106   :  { %68 = vrot.lane.b32.xlu1 %v67_v16, %s432_s30 }
 0x10d   :  { %v199_v49 = vpop.permute.xlu1 %198 }
 0x10e   :  { %v201_v50 = vsub.f32 %v469_v1, %v199_v49  ;;  %125 = vrot.lane.b32.xlu1 %v124_v33, %s433_s3  ;;  %v221_v52 = vpop.permute.xlu0 %220 }
 0x10f   :  { %v223_v53 = vsub.f32 %v469_v1, %v221_v52 }
 0x110   :  { %v202_v51 = vmul.f32 1.442695, %v201_v50 }
 0x111   :  { %v224_v55 = vmul.f32 1.442695, %v223_v53 }
 0x112   :  { %325 = vpow2.f32 %v202_v51 }
 0x113   :  { %327 = vpow2.f32 %v224_v55 }
 0x115   :  { %v232_v54 = vpop.permute.xlu1 %231 }
 0x116   :  { %151 = vrot.lane.b32.xlu1 %v150_v39, %s434_s4  ;;  %v247_v58 = vpop.permute.xlu0 %246  ;;  %v234_v14 = vsub.f32 %v469_v1, %v232_v54  ;;  %v194_v39 = vsub.f32 %v469_v1, %v489_v24 }
 0x117   :  { %v249_v61 = vsub.f32 %v244_v57, %v247_v58 }
 0x118   :  { %v326_v56 = vpop.eup %325  ;;  %v235_v15 = vmul.f32 1.442695, %v234_v14  ;;  %v195_v40 = vmul.f32 1.442695, %v194_v39 }
 0x119   :  { %v328_v62 = vpop.eup %327  ;;  %v250_v63 = vmul.f32 1.442695, %v249_v61 }
 0x11b   :  { %329 = vpow2.f32 %v250_v63 }
 0x11c   :  { %331 = vpow2.f32 %v213_v12 }
 0x11d   :  { %v58_v59 = vpop.permute.xlu1 %57  ;;  %333 = vpow2.f32 %v235_v15 }
 0x11e   :  { %205 = vrot.lane.b32.xlu1 %v326_v56, %s424_s22  ;;  %v60_v60 = vsel %vm44_vm2, %v58_v59, 0.0  ;;  %335 = vpow2.f32 %v195_v40 }
 0x11f   :  { %61 = vadd.xlane.f32.xlu2 %v60_v60 }
 0x121   :  { %v330_v3 = vpop.eup %329 }
 0x122   :  { %v332_v16 = vpop.eup %331 }
 0x123   :  { %v334_v17 = vpop.eup %333 }
 0x124   :  { %v336_v43 = vpop.eup %335 }
 0x125   :  { %v116_v0 = vpop.permute.xlu0 %115 }
 0x126   :  { %227 = vrot.lane.b32.xlu1 %v328_v62, %s426_s24  ;;  %v118_v2 = vsel %vm44_vm2, %v116_v0, 0.0 }
 0x127   :  { %119 = vadd.xlane.f32.xlu2 %v118_v2 }
 0x12d   :  { %v100_v6 = vpop.permute.xlu0 %99  ;;  %v172_v8 = vpop.permute.xlu2 %171 }
 0x12e   :  { %253 = vrot.lane.b32.xlu1 %v330_v3, %s435_s5 }
 0x135   :  { %v142_v4 = vpop.permute.xlu1 %141  ;;  %v74_v19 = vpop.permute.xlu2 %73 }
 0x136   :  { %v144_v5 = vsel %vm44_vm2, %v142_v4, 0.0 }
 0x137   :  { %145 = vadd.xlane.f32.xlu0 %v144_v5 }
 0x145   :  { %v174_v9 = vpop.permute.xlu0 %173 }
 0x146   :  { %v176_v10 = vsel %vm175_vm0, %v172_v8, %v174_v9 }
 0x147   :  { %v178_v11 = vsel %vm44_vm2, %v176_v10, 0.0 }
 0x148   :  { %179 = vadd.xlane.f32.xlu2 %v178_v11 }
 0x14b   :  { %184 = vrot.lane.b32.xlu0 %v183_v13, %s429_s27 }
 0x153   :  { %216 = vrot.lane.b32.xlu0 %v332_v16, %s425_s23 }
 0x15b   :  { %238 = vrot.lane.b32.xlu0 %v334_v17, %s428_s26 }
 0x160   :  { %v47_v18 = vpop.xlane.xlu1 %46 }
 0x172   :  { %v94_v22 = vpop.xlane.xlu0 %93 }
 0x178   :  { %v69_v21 = vpop.permute.xlu1 %68 }
 0x180   :  { %v126_v26 = vpop.permute.xlu1 %125 }
 0x188   :  { %v152_v34 = vpop.permute.xlu1 %151 }
 0x190   :  { %v206_v41 = vpop.permute.xlu1 %205 }
 0x191   :  { %v208_v44 = vadd.f32 %v336_v43, %v206_v41 }
 0x192   :  { %v62_v20 = vpop.xlane.xlu2 %61 }
 0x193   :  { %vm63_vm3 = vcmp.lt.f32.partialorder %v62_v20, %v47_v18 }
 0x194   :  { %v64_v23 = vsel %vm63_vm3, %v62_v20, %v47_v18  ;;  %v76_v30 = vsel %vm63_vm3, %v69_v21, %v74_v19 }
 0x195   :  { %vm95_vm4 = vcmp.lt.f32.partialorder %v94_v22, %v64_v23 }
 0x196   :  { %v96_v27 = vsel %vm95_vm4, %v94_v22, %v64_v23  ;;  %v102_v31 = vsel %vm95_vm4, %v100_v6, %v76_v30 }
 0x198   :  { %v228_v45 = vpop.permute.xlu1 %227 }
 0x19a   :  { %v120_v25 = vpop.xlane.xlu2 %119 }
 0x19b   :  { %vm121_vm5 = vcmp.lt.f32.partialorder %v120_v25, %v96_v27 }
 0x19c   :  { %v122_v29 = vsel %vm121_vm5, %v120_v25, %v96_v27  ;;  %v128_v35 = vsel %vm121_vm5, %v126_v26, %v102_v31 }
 0x1a0   :  { %v254_v50 = vpop.permute.xlu1 %253 }
 0x1aa   :  { %v146_v28 = vpop.xlane.xlu0 %145 }
 0x1ab   :  { %vm147_vm6 = vcmp.lt.f32.partialorder %v146_v28, %v122_v29 }
 0x1ac   :  { %v148_v33 = vsel %vm147_vm6, %v146_v28, %v122_v29  ;;  %v154_v37 = vsel %vm147_vm6, %v152_v34, %v128_v35 }
 0x1bb   :  { %v180_v32 = vpop.xlane.xlu2 %179 }
 0x1bc   :  { %vm181_vm7 = vcmp.lt.f32.partialorder %v180_v32, %v148_v33 }
 0x1bd   :  { %v185_v36 = vpop.permute.xlu0 %184 }
 0x1be   :  { %v187_v38 = vsel %vm181_vm7, %v185_v36, %v154_v37 }
 0x1bf   :  { %261 = vrot.lane.b32.xlu0 %v187_v38, %s435_s5 }
 0x1c5   :  { %v217_v42 = vpop.permute.xlu0 %216 }
 0x1c6   :  { %v219_v46 = vadd.f32 %v217_v42, %v208_v44 }
 0x1c8   :  { %v230_v48 = vadd.f32 %v228_v45, %v219_v46 }
 0x1cd   :  { %v239_v47 = vpop.permute.xlu0 %238 }
 0x1ce   :  { %v241_v49 = vadd.f32 %v239_v47, %v230_v48 }
 0x1d0   :  { %v256_v51 = vadd.f32 %v254_v50, %v241_v49 }
 0x1d2   :  { %337 = vlog2.f32 %v256_v51 }
 0x1d8   :  { %v338_v52 = vpop.eup %337 }
 0x1d9   :  { %v258_v53 = vmul.f32 0.6931472, %v338_v52 }
 0x1db   :  { %v259_v54 = vadd.f32 %v258_v53, %v489_v24 }
 0x231   :  { %v262_v55 = vpop.permute.xlu0 %261 }
 0x232   :  { %v264_v1 = vsub.f32 %v259_v54, %v262_v55 }
 0x234   :  { %266 = vst [vmem:[#allocation1] ss:$4 sm:$0xff] %v264_v1 }
 0x23b   :  { %v267_v56 = vld.sshfl [vmem:[#allocation1] sm:$0xff pattern:$0x73625140] }
 0x23c   :  { %268 = vrot.lane.b32.xlu1 %v267_v56, %s430_s28 }
 0x2ae   :  { %v269_v57 = vpop.permute.xlu1 %268 }
 0x2af   :  { %v272_v58 = vsel %vm271_vm8, %v269_v57, 0.0 }
 0x2b0   :  { %273 = vadd.xlane.f32.xlu0 %v272_v58 }
 0x323   :  { %v274_v59 = vpop.xlane.xlu0 %273 }
 0x324   :  { %v275_v60 = vrot.slane %v274_v59, 4 }
 0x326   :  { %v276_v61 = vadd.f32 %v275_v60, %v274_v59 }
 0x328   :  { %v277_v62 = vrot.slane %v276_v61, 2 }
 0x32a   :  { %v278_v63 = vadd.f32 %v277_v62, %v276_v61 }
 0x32c   :  { %v279_v0 = vrot.slane %v278_v63, 1 }
 0x32e   :  { %v280_v2 = vadd.f32 %v279_v0, %v278_v63 }
 0x330   :  { %303 = vpush %v280_v2 }
 0x361   :  { %s304_s11 = spop %303 }
 0x362   :  { %v282_v24 = vstv %s304_s11 }
 0x363   :  { %284 = vst.msk [vmem:[#allocation7] sm:$0x1] %vm283_vm9, %v282_v24 }
 0x364   :  { %295 = dma.vmem_to_hbm [thread:$0]  %s291_s7, 16, %s293_s10, [#allocation4]  }
 0x365   :  { %415 = dma.done.wait [#allocation4], 16  }
 0x366   :  { %416 = vsyncadd [#allocation4], 4294967280 }
 0x367   :  { %300 = vsyncpa [#allocation3], 1 }
 0x368   :  { %301 = vsyncpa [#allocation6], 1 }
 0x369   :  { %302 = vsyncpa [#allocation4], 1 }

</bundles_post_ra>
